<compile_context>
chip_gen: v7x
topology: tpu7x:2x2x1
jax: 0.10.0
libtpu: 0.0.40
codegen_flags: <defaults>
</compile_context>

<pallas_src>
import functools

import jax
import jax.numpy as jnp
from jax import lax
from jax.experimental import pallas as pl
from jax.experimental.pallas import tpu as pltpu


_LANE = 128
# In-kernel live-set target for one repeat chunk (input + scale*output).
# 64 vregs x 4 KiB = 256 KiB register file; target ~48 vregs so the repeat's
# intermediate never spills back to VMEM.
_CHUNK_BUDGET = 192 * 1024


def _round_down(x, m):
    return (x // m) * m


def _round_up(x, m):
    return ((x + m - 1) // m) * m


def _vmem_budgets():
    """Return (double-buffered tile working-set budget, vmem_limit_bytes)."""
    kind = ""
    try:
        kind = jax.devices()[0].device_kind.lower()
    except Exception:
        pass
    if ("v4" in kind) or ("v5" in kind) or ("v6" in kind):
        # 128 MiB physical VMEM: big tiles, raise the scoped limit explicitly.
        return 32 << 20, 80 << 20
    # v7x (64 MiB per-TC VMEM) and unknown chips: stay conservative.
    return 24 << 20, 48 << 20


def _choose_tiles(R, L, scale, itemsize, sub, ws_budget):
    """Pick (tm, tl) so 2*(1+scale)*tm*tl*itemsize <= ws_budget, preferring tl=L."""
    row_unit = 8 * sub                              # keeps row chunks dividing tm
    per_row_full = 2 * (1 + scale) * L * itemsize   # one full row (in + out), dbl-buffered

    if per_row_full * min(R, sub) <= ws_budget:
        # Full-row lane tiles: fully contiguous HBM reads (L) and writes (L*scale).
        tl = L
        tm_cap = max(1, ws_budget // per_row_full)
        if R <= tm_cap:
            tm = R
        elif tm_cap >= row_unit:
            tm = _round_down(tm_cap, row_unit)
        else:
            tm = _round_down(tm_cap, sub)           # >= sub here
    else:
        # L alone blows the budget even at `sub` rows: partial-L tiles.
        tm = min(R, sub)
        per_lane = 2 * (1 + scale) * tm * itemsize
        tl_cap = max(_LANE, ws_budget // per_lane)
        tl = min(L, max(_LANE, _round_down(tl_cap, _LANE)))

    # Keep >= 2 blocks along the leading "parallel" row axis when the whole
    # problem would otherwise be a single block, so v7x's two TensorCores both
    # get work (near-free on single-TC v5e/v6e).
    if tm == R and tl == L and R >= 2 * sub:
        half = _round_up(pl.cdiv(R, 2), sub)
        if half < R:
            tm = half
    return tm, tl


def _choose_chunks(tm, tl, scale, itemsize, sub):
    """Pick (row_chunk, lane_chunk) so one repeat chunk's live set fits ~48 vregs."""
    per_elem = (1 + scale) * itemsize
    if tm * tl * per_elem <= _CHUNK_BUDGET:
        return tm, tl                                # single-shot repeat
    rc_cap = _CHUNK_BUDGET // (tl * per_elem)
    if rc_cap >= sub:
        # Snap to {1,2,4,8}*sub so it divides tm whenever tm % (8*sub) == 0.
        rc = sub
        while rc * 2 <= min(rc_cap, 8 * sub):
            rc *= 2
        return min(tm, rc), tl
    # Even `sub` rows of full-tl don't fit: chunk the lane axis too.
    rc = min(tm, sub)
    lc_cap = _CHUNK_BUDGET // (rc * per_elem)
    lc = min(tl, max(_LANE, _round_down(lc_cap, _LANE)))
    return rc, lc


def _upscale1d_kernel(x_ref, o_ref, *, scale, row_chunk, lane_chunk):
    # x_ref : (tm, tl)          VMEM tile
    # o_ref : (tm, tl * scale)  VMEM tile (lane-dense)
    tm, tl = x_ref.shape
    n_row_full, row_rem = divmod(tm, row_chunk)
    n_lane_full, lane_rem = divmod(tl, lane_chunk)

    def emit(r0, nrows, c_in, c_out, nlanes):
        x = x_ref[pl.ds(r0, nrows), pl.ds(c_in, nlanes)]
        o_ref[pl.ds(r0, nrows), pl.ds(c_out, nlanes * scale)] = (
            jnp.repeat(x, scale, axis=-1))

    def row_body(r0, nrows):
        if n_lane_full == 1:
            emit(r0, nrows, 0, 0, lane_chunk)
        elif n_lane_full > 1:
            def lane_body(li, carry):
                c_in = pl.multiple_of(li * lane_chunk, lane_chunk)
                c_out = pl.multiple_of(li * (lane_chunk * scale),
                                       lane_chunk * scale)
                emit(r0, nrows, c_in, c_out, lane_chunk)
                return carry
            lax.fori_loop(0, n_lane_full, lane_body, 0,
                          unroll=min(n_lane_full, 4))
        if lane_rem:
            emit(r0, nrows, n_lane_full * lane_chunk,
                 n_lane_full * lane_chunk * scale, lane_rem)

    if n_row_full == 1:
        row_body(0, row_chunk)
    elif n_row_full > 1:
        def body(ri, carry):
            r0 = pl.multiple_of(ri * row_chunk, row_chunk)
            row_body(r0, row_chunk)
            return carry
        lax.fori_loop(0, n_row_full, body, 0, unroll=min(n_row_full, 8))
    if row_rem:
        row_body(n_row_full * row_chunk, row_rem)


def upscale1d(x, scale_factor: int):
    """1-D nearest-neighbor upsampling along the last axis by `scale_factor`."""
    assert x.ndim == 3, x.shape
    scale = int(scale_factor)
    assert scale >= 1
    N, C, L = x.shape
    R = N * C
    out_L = L * scale
    itemsize = jnp.dtype(x.dtype).itemsize
    # Native sublane multiple: 8 for f32, 16 for bf16, 32 for int8/fp8.
    sub = max(8, 32 // itemsize)

    ws_budget, vmem_limit = _vmem_budgets()
    tm, tl = _choose_tiles(R, L, scale, itemsize, sub, ws_budget)
    row_chunk, lane_chunk = _choose_chunks(tm, tl, scale, itemsize, sub)

    grid = (pl.cdiv(R, tm), pl.cdiv(L, tl))

    kernel = functools.partial(
        _upscale1d_kernel, scale=scale, row_chunk=row_chunk,
        lane_chunk=lane_chunk)

    out2 = pl.pallas_call(
        kernel,
        out_shape=jax.ShapeDtypeStruct((R, out_L), x.dtype),
        grid_spec=pl.GridSpec(
            grid=grid,
            in_specs=[pl.BlockSpec((tm, tl), lambda i, j: (i, j))],
            out_specs=pl.BlockSpec((tm, tl * scale), lambda i, j: (i, j)),
        ),
        compiler_params=pltpu.CompilerParams(
            dimension_semantics=("parallel", "parallel"),
            vmem_limit_bytes=vmem_limit,
        ),
        cost_estimate=pl.CostEstimate(
            flops=0,
            transcendentals=0,
            bytes_accessed=(1 + scale) * R * L * itemsize,
        ),
    )(x.reshape(R, L))

    return out2.reshape(N, C, out_L)


if __name__ == "__main__":
    key = jax.random.PRNGKey(0)

    # Small shape consistent with the module's forward: (N, C, L).
    N, C, L = 2, 4, 16
    scale_factor = 4
    x = jax.random.normal(key, (N, C, L), dtype=jnp.float32)

    y = jax.block_until_ready(upscale1d(x, scale_factor))
    y_ref = jnp.repeat(x, scale_factor, axis=-1)

    assert y.shape == (N, C, L * scale_factor), y.shape
    assert y.dtype == x.dtype
    assert jnp.array_equal(y, y_ref), "mismatch vs reference upsampling (small)"

    # Tiled f32 path: multi-block grid + chunked in-kernel repeat.
    x2 = jax.random.normal(jax.random.PRNGKey(1), (2, 96, 2048), dtype=jnp.float32)
    y2 = jax.block_until_ready(upscale1d(x2, 2))
    assert jnp.array_equal(y2, jnp.repeat(x2, 2, axis=-1)), "mismatch (tiled f32)"

    # Ragged rows + tail block + row-chunk loop (R=100 not a multiple of tm).
    x3 = jax.random.normal(jax.random.PRNGKey(2), (2, 50, 1024), dtype=jnp.float32)
    y3 = jax.block_until_ready(upscale1d(x3, 4))
    assert jnp.array_equal(y3, jnp.repeat(x3, 4, axis=-1)), "mismatch (ragged rows)"

    # bf16 path (sublane multiple 16).
    x4 = jax.random.normal(jax.random.PRNGKey(3), (2, 96, 2048),
                           dtype=jnp.bfloat16)
    y4 = jax.block_until_ready(upscale1d(x4, 2))
    assert jnp.array_equal(y4, jnp.repeat(x4, 2, axis=-1)), "mismatch (bf16)"

    print("KERNEL_OK")
</pallas_src>

<mosaic_0001>
module attributes {stable_mosaic.version = 11 : i64} {
  func.func @_upscale1d_kernel(%arg0: i32, %arg1: i32, %arg2: memref<8x16xf32, #tpu.memory_space<vmem>>, %arg3: memref<8x64xf32, #tpu.memory_space<vmem>>) attributes {dimension_semantics = [#tpu.dimension_semantics<parallel>, #tpu.dimension_semantics<parallel>], iteration_bounds = array<i64: 1, 1>, scalar_prefetch = 0 : i64, scratch_operands = 0 : i64, tpu.core_type = #tpu.core_type<tc>, window_params = [{transform_indices = @transform_0, window_bounds = array<i64: 8, 16>}, {transform_indices = @transform_1, window_bounds = array<i64: 8, 64>}]} {
    %c0 = arith.constant 0 : index
    %c0_0 = arith.constant 0 : index
    %0 = vector.load %arg2[%c0, %c0_0] : memref<8x16xf32, #tpu.memory_space<vmem>>, vector<8x16xf32>
    %1 = vector.shape_cast %0 : vector<8x16xf32> to vector<8x16x1xf32>
    %2 = vector.broadcast %1 : vector<8x16x1xf32> to vector<8x16x4xf32>
    %3 = vector.shape_cast %2 : vector<8x16x4xf32> to vector<8x64xf32>
    %c0_1 = arith.constant 0 : index
    %c0_2 = arith.constant 0 : index
    %4 = vector.load %arg3[%c0_1, %c0_2] : memref<8x64xf32, #tpu.memory_space<vmem>>, vector<8x64xf32>
    tpu.vector_store %arg3[%c0_1, %c0_2], %3 {strides = array<i32>} : memref<8x64xf32, #tpu.memory_space<vmem>>, vector<8x64xf32>,
    return
  }
  func.func @transform_0(%arg0: i32, %arg1: i32) -> (i32, i32) {
    %c0_i32 = arith.constant 0 : i32
    return %arg0, %arg1 : i32, i32
  }
  func.func @transform_1(%arg0: i32, %arg1: i32) -> (i32, i32) {
    %c0_i32 = arith.constant 0 : i32
    return %arg0, %arg1 : i32, i32
  }
}

</mosaic_0001>

<bundles_post_ra>
// kernel: tpu_custom_call.1
= control target key start
LH: loop header
LB: loop body
LE: loop exit
PB: predicated region body
PF: predicated region fallthrough
CT: control target
= control target key end

     0   :  { %6 = vsyncpa [#allocation3], 0  ;;  %s668_s0 = inlined_call_operand.hbm [shape: f32[8,16], index: 0, kind: input, shape index: {}]   ;;  %s669_s1 = inlined_call_operand.hbm [shape: f32[8,64], index: 1, kind: output, shape index: {}]  }
   0x1   :  { %7 = vsyncpa [#allocation4], 0  ;;  %s556_s6 = smov [#allocation2]   ;;  %s508_s10 = scalar_lea.hbm %s668_s0, 128 }
   0x2   :  { %s14_s7 = sshll.u32 %s556_s6, 4  ;;  %p509_p0 = scmp.ne.s32.totalorder %s668_s0, %s508_s10  ;;  %s15_s7 = int_to_ptr.vmem [resolvable:$true] %s14_s7 }
   0x3   :  { %p512_p1 = scmp.lt.u32.totalorder %s508_s10, %s668_s0 }
   0x5   :  { %p514_p2 = pnand %p512_p1, %p509_p0 }
   0x7   :  { %517 = shalt.err (!%p514_p2)
}
   0x8   :  { %s518_s15 = scalar_lea.vmem %s15_s7, 128  ;;  %p523_p4 = scmp.lt.s32.totalorder %s15_s7, %s15_s7 }
   0x9   :  { %p519_p3 = scmp.ne.s32.totalorder %s15_s7, %s518_s15  ;;  %p524_p5 = scmp.lt.s32.totalorder %s518_s15, %s518_s15 }
   0xb   :  { %p525_p6 = por %p524_p5, %p523_p4 }
   0xd   :  { %p526_p7 = pnand %p525_p6, %p519_p3 }
   0xf   :  { %529 = shalt.err (!%p526_p7)
}
  0x10   :  { %17 = dma.hbm_to_vmem [thread:$0]  %s668_s0, 128, %s15_s7, [#allocation3]  }
  0x11   :  { %552 = dma.done.wait [#allocation3], 128  }
  0x12   :  { %553 = vsyncadd [#allocation3], 4294967168  ;;  %v22_v0 = vlaneseq  ;;  %v21_v6 = vld [vmem:[#allocation2] sm:$0xff]  ;;  %v557_v21 = vmov 1983009808   ;;  %s559_s0 = smov 8  }
  0x13   :  { %v113_v22 = vunpack.c.l.s4 %v557_v21  ;;  %v558_v26 = vmov 1934713408   ;;  %s560_s18 = smov 4   ;;  %s561_s19 = smov 16   ;;  %vm442_vm0 = vcmask 31744   ;;  %vm444_vm1 = vcmask 64512  }
  0x14   :  { %v597_v1 = vshrl.u32 %v22_v0, 7  ;;  %v177_v27 = vunpack.c.l.s4 %v558_v26  ;;  %s562_s20 = smov 12   ;;  %s563_s21 = smov 24   ;;  %vm446_vm2 = vcmask 97280   ;;  %vm448_vm3 = vcmask 130048  }
  0x15   :  { %v114_v25 = vunpack.c.0.s8 %v113_v22  ;;  %s564_s22 = smov 20   ;;  %s565_s23 = smov 28   ;;  %vm450_vm4 = vcmask 162816   ;;  %vm452_vm5 = vcmask 195584   ;;  %vm454_vm6 = vcmask 228352  }
  0x16   :  { %v46_v2 = vsub.s32 2, %v597_v1  ;;  %v24_v3 = vsub.s32 0, %v597_v1  ;;  %v57_v4 = vsub.s32 3, %v597_v1  ;;  %v35_v5 = vsub.s32 1, %v597_v1  ;;  %s566_s24 = smov 32   ;;  %s567_s25 = smov 36  }
  0x17   :  { %v79_v11 = vsub.s32 5, %v597_v1  ;;  %v68_v12 = vsub.s32 4, %v597_v1  ;;  %v101_v15 = vsub.s32 7, %v597_v1  ;;  %v90_v16 = vsub.s32 6, %v597_v1  ;;  %s568_s26 = smov 40   ;;  %s569_s27 = smov 44  }
  0x18   :  { %v47_v7 = vrot.slane %v21_v6, %v46_v2  ;;  %v25_v8 = vrot.slane %v21_v6, %v24_v3  ;;  %v58_v9 = vrot.slane %v21_v6, %v57_v4  ;;  %v36_v10 = vrot.slane %v21_v6, %v35_v5  ;;  %s570_s28 = smov 48   ;;  %s571_s29 = smov 52  }
  0x19   :  { %v80_v13 = vrot.slane %v21_v6, %v79_v11  ;;  %v69_v14 = vrot.slane %v21_v6, %v68_v12  ;;  %v102_v17 = vrot.slane %v21_v6, %v101_v15  ;;  %v91_v18 = vrot.slane %v21_v6, %v90_v16  ;;  %s572_s30 = smov 56   ;;  %s573_s2 = smov 60  }
  0x1a   :  { %49 = vbcast.lane.b32.xlu1 %v47_v7, 256  ;;  %27 = vbcast.lane.b32.xlu0 %v25_v8, 256  ;;  %v608_v31 = vsub.s32 %v114_v25, %v597_v1  ;;  %v178_v33 = vunpack.c.0.s8 %v177_v27  ;;  %vm456_vm7 = vcmask 261120   ;;  %vm458_vm8 = vcmask 293888   ;;  %s574_s3 = smov [#allocation5]  }
  0x1b   :  { %vm460_vm9 = vcmask 326656   ;;  %vm462_vm10 = vcmask 359424   ;;  %vm464_vm11 = vcmask 392192   ;;  %vm466_vm12 = vcmask 424960   ;;  %s480_s4 = sshll.u32 %s574_s3, 4  ;;  %s481_s4 = int_to_ptr.vmem [resolvable:$true] %s480_s4 }
  0x1c   :  { %v617_v48 = vsub.s32 %v178_v33, %v597_v1  ;;  %vm468_vm13 = vcmask 457728   ;;  %vm470_vm14 = vcmask 490496   ;;  %vm472_vm15 = vcmask 523264   ;;  %s530_s5 = scalar_lea.vmem %s481_s4, 128  ;;  %p535_p9 = scmp.lt.s32.totalorder %s481_s4, %s481_s4 }
  0x1d   :  { %p531_p8 = scmp.ne.s32.totalorder %s481_s4, %s530_s5  ;;  %p536_p10 = scmp.lt.s32.totalorder %s530_s5, %s530_s5 }
  0x1e   :  { %60 = vbcast.lane.b32.xlu1 %v58_v9, 256  ;;  %38 = vbcast.lane.b32.xlu0 %v36_v10, 256 }
  0x1f   :  { %p537_p11 = por %p536_p10, %p535_p9 }
  0x21   :  { %p538_p12 = pnand %p537_p11, %p531_p8 }
  0x22   :  { %82 = vbcast.lane.b32.xlu1 %v80_v13, 256  ;;  %71 = vbcast.lane.b32.xlu0 %v69_v14, 256 }
  0x26   :  { %104 = vbcast.lane.b32.xlu1 %v102_v17, 256  ;;  %93 = vbcast.lane.b32.xlu0 %v91_v18, 256 }
  0x2a   :  { %42 = vbcast.lane.b32.xlu1 %v36_v10, 264  ;;  %31 = vbcast.lane.b32.xlu0 %v25_v8, 264 }
  0x2e   :  { %64 = vbcast.lane.b32.xlu1 %v58_v9, 264  ;;  %53 = vbcast.lane.b32.xlu0 %v47_v7, 264 }
  0x32   :  { %86 = vbcast.lane.b32.xlu1 %v80_v13, 264  ;;  %75 = vbcast.lane.b32.xlu0 %v69_v14, 264 }
  0x36   :  { %108 = vbcast.lane.b32.xlu1 %v102_v17, 264  ;;  %97 = vbcast.lane.b32.xlu0 %v91_v18, 264 }
  0x8c   :  { %v50_v19 = vpop.permute.xlu1 %49  ;;  %v28_v20 = vpop.permute.xlu0 %27 }
  0x8d   :  { %v110_v32 = vcombine.low %v28_v20, %v50_v19  ;;  %v111_v42 = vcombine.high %v28_v20, %v50_v19 }
  0x8f   :  { %v118_v43 = vrot.slane %v110_v32, %v608_v31  ;;  %v125_v56 = vrot.slane %v111_v42, %v608_v31 }
  0x90   :  { %v61_v23 = vpop.permute.xlu1 %60  ;;  %v39_v24 = vpop.permute.xlu0 %38 }
  0x91   :  { %v126_v28 = vcombine.low %v39_v24, %v61_v23  ;;  %v127_v34 = vcombine.high %v39_v24, %v61_v23 }
  0x93   :  { %v134_v35 = vrot.slane %v126_v28, %v608_v31  ;;  %v141_v49 = vrot.slane %v127_v34, %v608_v31 }
  0x94   :  { %v83_v29 = vpop.permute.xlu1 %82  ;;  %v72_v30 = vpop.permute.xlu0 %71 }
  0x95   :  { %v174_v50 = vcombine.low %v118_v43, %v134_v35  ;;  %v175_v51 = vcombine.high %v118_v43, %v134_v35  ;;  %v190_v60 = vcombine.low %v125_v56, %v141_v49  ;;  %v191_v7 = vcombine.high %v125_v56, %v141_v49 }
  0x97   :  { %v189_v63 = vrot.slane %v175_v51, %v617_v48  ;;  %v627_v0 = vrot.slane %v174_v50, %v617_v48  ;;  %v198_v10 = vrot.slane %v190_v60, %v617_v48  ;;  %v205_v19 = vrot.slane %v191_v7, %v617_v48 }
  0x98   :  { %v105_v36 = vpop.permute.xlu1 %104  ;;  %v94_v37 = vpop.permute.xlu0 %93 }
  0x99   :  { %v158_v38 = vcombine.low %v83_v29, %v105_v36  ;;  %v159_v39 = vcombine.high %v83_v29, %v105_v36  ;;  %v142_v40 = vcombine.low %v72_v30, %v94_v37  ;;  %v143_v41 = vcombine.high %v72_v30, %v94_v37 }
  0x9b   :  { %v166_v44 = vrot.slane %v158_v38, %v608_v31  ;;  %v173_v45 = vrot.slane %v159_v39, %v608_v31  ;;  %v150_v46 = vrot.slane %v142_v40, %v608_v31  ;;  %v157_v47 = vrot.slane %v143_v41, %v608_v31 }
  0x9c   :  { %v43_v52 = vpop.permute.xlu1 %42  ;;  %v32_v53 = vpop.permute.xlu0 %31 }
  0x9d   :  { %v206_v54 = vcombine.low %v150_v46, %v166_v44  ;;  %v207_v55 = vcombine.high %v150_v46, %v166_v44  ;;  %v222_v57 = vcombine.low %v157_v47, %v173_v45  ;;  %v223_v1 = vcombine.high %v157_v47, %v173_v45 }
  0x9f   :  { %v221_v58 = vrot.slane %v207_v55, %v617_v48  ;;  %v623_v59 = vrot.slane %v206_v54, %v617_v48  ;;  %v230_v4 = vrot.slane %v222_v57, %v617_v48  ;;  %v237_v13 = vrot.slane %v223_v1, %v617_v48 }
  0xa0   :  { %v65_v61 = vpop.permute.xlu1 %64  ;;  %v54_v62 = vpop.permute.xlu0 %53 }
  0xa1   :  { %v240_v2 = vcombine.low %v189_v63, %v221_v58  ;;  %v239_v3 = vcombine.high %v627_v0, %v623_v59  ;;  %v262_v5 = vcombine.low %v43_v52, %v65_v61  ;;  %v246_v6 = vcombine.low %v32_v53, %v54_v62 }
  0xa2   :  { %v242_v11 = vcombine.low %v198_v10, %v230_v4  ;;  %v241_v12 = vcombine.high %v189_v63, %v221_v58  ;;  %v238_v14 = vcombine.low %v627_v0, %v623_v59  ;;  %v263_v24 = vcombine.high %v43_v52, %v65_v61 }
  0xa3   :  { %387 = vrot.lane.b32.xlu1 %v240_v2, %s559_s0  ;;  %383 = vrot.lane.b32.xlu0 %v239_v3, %s560_s18  ;;  %v270_v15 = vrot.slane %v262_v5, %v608_v31  ;;  %v254_v16 = vrot.slane %v246_v6, %v608_v31  ;;  %v244_v25 = vcombine.low %v205_v19, %v237_v13 }
  0xa4   :  { %v87_v8 = vpop.permute.xlu1 %86  ;;  %v76_v9 = vpop.permute.xlu0 %75  ;;  %v243_v26 = vcombine.high %v198_v10, %v230_v4  ;;  %v247_v27 = vcombine.high %v32_v53, %v54_v62  ;;  %v277_v36 = vrot.slane %v263_v24, %v608_v31  ;;  %v245_v37 = vcombine.high %v205_v19, %v237_v13 }
  0xa5   :  { %v310_v28 = vcombine.low %v254_v16, %v270_v15  ;;  %v311_v39 = vcombine.high %v254_v16, %v270_v15 }
  0xa6   :  { %v261_v38 = vrot.slane %v247_v27, %v608_v31 }
  0xa7   :  { %395 = vrot.lane.b32.xlu1 %v242_v11, %s561_s19  ;;  %391 = vrot.lane.b32.xlu0 %v241_v12, %s562_s20  ;;  %v318_v40 = vrot.slane %v310_v28, %v617_v48  ;;  %v325_v47 = vrot.slane %v311_v39, %v617_v48 }
  0xa8   :  { %v109_v17 = vpop.permute.xlu1 %108  ;;  %v98_v18 = vpop.permute.xlu0 %97  ;;  %v326_v46 = vcombine.low %v261_v38, %v277_v36  ;;  %v327_v52 = vcombine.high %v261_v38, %v277_v36 }
  0xa9   :  { %v294_v20 = vcombine.low %v87_v8, %v109_v17  ;;  %v295_v21 = vcombine.high %v87_v8, %v109_v17  ;;  %v278_v22 = vcombine.low %v76_v9, %v98_v18  ;;  %v279_v23 = vcombine.high %v76_v9, %v98_v18 }
  0xaa   :  { %v334_v53 = vrot.slane %v326_v46, %v617_v48  ;;  %v341_v57 = vrot.slane %v327_v52, %v617_v48 }
  0xab   :  { %v302_v29 = vrot.slane %v294_v20, %v608_v31  ;;  %v286_v30 = vrot.slane %v278_v22, %v608_v31  ;;  %403 = vrot.lane.b32.xlu1 %v244_v25, %s563_s21  ;;  %399 = vrot.lane.b32.xlu0 %v243_v26, %s564_s22  ;;  %v309_v32 = vrot.slane %v295_v21, %v608_v31 }
  0xac   :  { %v293_v33 = vrot.slane %v279_v23, %v608_v31 }
  0xad   :  { %v342_v34 = vcombine.low %v286_v30, %v302_v29  ;;  %v343_v35 = vcombine.high %v286_v30, %v302_v29 }
  0xae   :  { %v358_v42 = vcombine.low %v293_v33, %v309_v32  ;;  %v359_v31 = vcombine.high %v293_v33, %v309_v32 }
  0xaf   :  { %v350_v41 = vrot.slane %v342_v34, %v617_v48  ;;  %407 = vrot.lane.b32.xlu0 %v245_v37, %s565_s23  ;;  %v357_v45 = vrot.slane %v343_v35, %v617_v48 }
  0xb0   :  { %v366_v50 = vrot.slane %v358_v42, %v617_v48  ;;  %v373_v55 = vrot.slane %v359_v31, %v617_v48 }
  0xb1   :  { %v375_v43 = vcombine.high %v318_v40, %v350_v41  ;;  %v374_v44 = vcombine.low %v318_v40, %v350_v41  ;;  %v376_v49 = vcombine.low %v325_v47, %v357_v45  ;;  %v377_v51 = vcombine.high %v325_v47, %v357_v45 }
  0xb2   :  { %v378_v54 = vcombine.low %v334_v53, %v366_v50  ;;  %v379_v56 = vcombine.high %v334_v53, %v366_v50  ;;  %v380_v58 = vcombine.low %v341_v57, %v373_v55  ;;  %v381_v60 = vcombine.high %v341_v57, %v373_v55 }
  0xb3   :  { %411 = vrot.lane.b32.xlu1 %v374_v44, %s566_s24  ;;  %415 = vrot.lane.b32.xlu0 %v375_v43, %s567_s25 }
  0xb7   :  { %419 = vrot.lane.b32.xlu1 %v376_v49, %s568_s26  ;;  %423 = vrot.lane.b32.xlu0 %v377_v51, %s569_s27 }
  0xbb   :  { %427 = vrot.lane.b32.xlu1 %v378_v54, %s570_s28  ;;  %431 = vrot.lane.b32.xlu0 %v379_v56, %s571_s29 }
  0xbf   :  { %435 = vrot.lane.b32.xlu1 %v380_v58, %s572_s30  ;;  %439 = vrot.lane.b32.xlu0 %v381_v60, %s573_s2 }
 0x115   :  { %v388_v61 = vpop.permute.xlu1 %387  ;;  %v384_v62 = vpop.permute.xlu0 %383 }
 0x116   :  { %v443_v63 = vsel %vm442_vm0, %v238_v14, %v384_v62 }
 0x117   :  { %v445_v48 = vsel %vm444_vm1, %v443_v63, %v388_v61 }
 0x119   :  { %v392_v1 = vpop.permute.xlu0 %391  ;;  %v396_v2 = vpop.permute.xlu1 %395 }
 0x11a   :  { %v447_v3 = vsel %vm446_vm2, %v445_v48, %v392_v1 }
 0x11b   :  { %v449_v5 = vsel %vm448_vm3, %v447_v3, %v396_v2 }
 0x11d   :  { %v400_v4 = vpop.permute.xlu0 %399  ;;  %v404_v6 = vpop.permute.xlu1 %403 }
 0x11e   :  { %v451_v7 = vsel %vm450_vm4, %v449_v5, %v400_v4 }
 0x11f   :  { %v453_v9 = vsel %vm452_vm5, %v451_v7, %v404_v6 }
 0x121   :  { %v408_v8 = vpop.permute.xlu0 %407 }
 0x122   :  { %v455_v10 = vsel %vm454_vm6, %v453_v9, %v408_v8 }
 0x125   :  { %v412_v59 = vpop.permute.xlu1 %411  ;;  %v416_v11 = vpop.permute.xlu0 %415 }
 0x126   :  { %v457_v0 = vsel %vm456_vm7, %v455_v10, %v412_v59 }
 0x127   :  { %v459_v12 = vsel %vm458_vm8, %v457_v0, %v416_v11 }
 0x129   :  { %v420_v13 = vpop.permute.xlu1 %419  ;;  %v424_v15 = vpop.permute.xlu0 %423 }
 0x12a   :  { %v461_v14 = vsel %vm460_vm9, %v459_v12, %v420_v13 }
 0x12b   :  { %v463_v16 = vsel %vm462_vm10, %v461_v14, %v424_v15 }
 0x12d   :  { %v428_v17 = vpop.permute.xlu1 %427  ;;  %v432_v19 = vpop.permute.xlu0 %431 }
 0x12e   :  { %v465_v18 = vsel %vm464_vm11, %v463_v16, %v428_v17 }
 0x12f   :  { %v467_v20 = vsel %vm466_vm12, %v465_v18, %v432_v19 }
 0x131   :  { %v436_v21 = vpop.permute.xlu1 %435  ;;  %v440_v23 = vpop.permute.xlu0 %439 }
 0x132   :  { %v469_v22 = vsel %vm468_vm13, %v467_v20, %v436_v21 }
 0x133   :  { %v471_v24 = vsel %vm470_vm14, %v469_v22, %v440_v23 }
 0x134   :  { %473 = vst.msk [vmem:[#allocation5] sm:$0xff] %vm472_vm15, %v471_v24 }
 0x135   :  { %541 = shalt.err (!%p538_p12)
}
 0x136   :  { %s542_s8 = scalar_lea.hbm %s669_s1, 128 }
 0x137   :  { %p543_p13 = scmp.ne.s32.totalorder %s669_s1, %s542_s8  ;;  %p546_p0 = scmp.lt.u32.totalorder %s542_s8, %s669_s1 }
 0x139   :  { %p548_p1 = pnand %p546_p0, %p543_p13 }
 0x13b   :  { %551 = shalt.err (!%p548_p1)
}
 0x13c   :  { %483 = dma.vmem_to_hbm [thread:$0]  %s481_s4, 128, %s669_s1, [#allocation4]  }
 0x13d   :  { %554 = dma.done.wait [#allocation4], 128  }
 0x13e   :  { %555 = vsyncadd [#allocation4], 4294967168 }
 0x13f   :  { %487 = vsyncpa [#allocation3], 1 }
 0x140   :  { %488 = vsyncpa [#allocation4], 1 }

</bundles_post_ra>
